<compile_context>
chip_gen: v5e
topology: v5e:2x2
jax: 0.10.0
libtpu: 0.0.40
codegen_flags: <defaults>
</compile_context>

<pallas_src>
import functools

import jax
import jax.numpy as jnp
import numpy as np
from jax.experimental import pallas as pl
from jax.experimental.pallas import tpu as pltpu


def _round_up(x, m):
    return (x + m - 1) // m * m


def _cdiv(a, b):
    return (a + b - 1) // b


# ----------------------------------------------------------------------------
# Kernel: trunk -> fused heads -> discriminative / VAE -> decoder, one batch tile.
# ----------------------------------------------------------------------------
def _fused_mlp_kernel(x_ref, eps_ref, *refs, n_wslabs, layer_meta,
                      d3, d4, latent, hidden, out_pad):
    w_refs = refs[:n_wslabs]
    b_ref = refs[n_wslabs]
    out_ref = refs[n_wslabs + 1]
    mm_dtype = w_refs[0].dtype           # bf16 matmul inputs; f32 accumulation

    def layer(h, idx):
        sid, r0, din, dout = layer_meta[idx]
        w = w_refs[sid][r0:r0 + din, 0:dout]   # static slice of a VMEM-resident slab
        b = b_ref[idx:idx + 1, 0:dout]         # f32 bias row
        return jnp.dot(h.astype(mm_dtype), w,
                       preferred_element_type=jnp.float32) + b

    x = x_ref[...]                             # (BT, hidden), already bf16

    # Shared trunk: Linear -> ReLU -> (dropout=id) -> Linear -> ReLU -> (dropout=id)
    h1 = jnp.maximum(layer(x, 0), 0.0)
    h_shared = jnp.maximum(layer(h1, 1), 0.0)

    # Fused heads: [disc.layer1 | mu | logvar] in a single MXU pass over h_shared.
    heads = layer(h_shared, 2)
    d_hid = jnp.maximum(heads[:, 0:d3], 0.0)
    mu = heads[:, d3:d3 + latent]
    logvar = heads[:, d3 + latent:d3 + 2 * latent]

    # Discriminative content features.
    z_i = layer(d_hid, 3)                      # (BT, d4)

    # Reparameterization trick (f32 elementwise). Zero-padded batch rows only see
    # exp(0.5*bias)-sized values (finite for sane checkpoints) and are sliced off
    # in the wrapper.
    std = jnp.exp(0.5 * logvar)
    z_v = mu + eps_ref[:, 0:latent] * std      # (BT, latent)
    z_c = z_i + z_v                            # requires d4 == latent_dim

    # Reconstruction decoder: Linear -> ReLU -> (dropout=id) -> Linear
    r1 = jnp.maximum(layer(z_c, 4), 0.0)
    rec = layer(r1, 5)                         # (BT, hidden)

    # Only the non-recomputable outputs are written back (z_V / z_combined are
    # rebuilt in the wrapper from mu/logvar/eps/z_I -> fewer HBM write bytes).
    pieces = [z_i, mu, logvar, rec]
    if out_pad > 0:
        pieces.append(jnp.zeros((z_i.shape[0], out_pad), jnp.float32))
    # One lane-dense (multiple-of-128 wide) store instead of narrow masked stores.
    out_ref[...] = jnp.concatenate(pieces, axis=-1)


# ----------------------------------------------------------------------------
# One-time parameter packing (hoisted out of the per-forward path).
# ----------------------------------------------------------------------------
def pack_params(params, *, mm_dtype=jnp.bfloat16):
    """Pack all 8 Linear layers into at most two bf16 weight slabs + one f32 bias slab.

    Done with numpy ONCE; the packed result is reused for every forward call.
    The three Linears consuming h_shared (disc.layer1, mu, logvar) are fused into a
    single [d2, d3 + 2*latent] block so they run as one MXU pass in the kernel.
    """
    hidden = int(params["w1"].shape[0])
    d3 = int(params["wd1"].shape[1])
    d4 = int(params["wd2"].shape[1])
    latent = int(params["wmu"].shape[1])
    if d4 != latent:
        raise ValueError("`z_I + z_V` in the reference forward requires d4 == latent_dim")

    np_p = {k: np.asarray(v, dtype=np.float32) for k, v in params.items()}
    w_heads = np.concatenate([np_p["wd1"], np_p["wmu"], np_p["wlv"]], axis=1)
    b_heads = np.concatenate([np_p["bd1"].ravel(), np_p["bmu"].ravel(), np_p["blv"].ravel()])

    layers = [
        (np_p["w1"], np_p["b1"]),     # 0: trunk layer1   (hidden -> d1)
        (np_p["w2"], np_p["b2"]),     # 1: trunk layer2   (d1 -> d2)
        (w_heads, b_heads),           # 2: fused heads    (d2 -> d3 + 2*latent)
        (np_p["wd2"], np_p["bd2"]),   # 3: disc layer2    (d3 -> d4)
        (np_p["wr1"], np_p["br1"]),   # 4: decoder layer1 (d4 -> dec_hidden)
        (np_p["wr2"], np_p["br2"]),   # 5: decoder layer2 (dec_hidden -> hidden)
    ]
    n_layers = len(layers)
    in_dims = [int(w.shape[0]) for w, _ in layers]
    out_dims = [int(w.shape[1]) for w, _ in layers]
    padded_out = [_round_up(d, 128) for d in out_dims]
    wide_w = max(padded_out)

    # Group layers into (at most) two slabs by padded output width: only layers
    # needing the full width live in the wide slab; the rest share a narrower one.
    groups = [[i for i in range(n_layers) if padded_out[i] == wide_w]]
    widths = [wide_w]
    narrow = [i for i in range(n_layers) if padded_out[i] < wide_w]
    if narrow:
        groups.append(narrow)
        widths.append(max(padded_out[i] for i in narrow))

    layer_meta = [None] * n_layers
    w_slabs = []
    for sid, (width, idxs) in enumerate(zip(widths, groups)):
        offs, off = [], 0
        for i in idxs:
            offs.append(off)
            off += _round_up(in_dims[i], 16)     # 16-row alignment -> clean bf16 tiles
        rows = _round_up(max(off, 16), 16)
        slab = np.zeros((rows, width), np.float32)
        for i, r0 in zip(idxs, offs):
            slab[r0:r0 + in_dims[i], 0:out_dims[i]] = layers[i][0]
            layer_meta[i] = (sid, r0, in_dims[i], out_dims[i])
        w_slabs.append(jnp.asarray(slab, dtype=mm_dtype))   # bf16 matmul inputs

    b_slab = np.zeros((_round_up(n_layers, 8), wide_w), np.float32)  # f32 biases
    for i, (_, b) in enumerate(layers):
        b_slab[i, 0:out_dims[i]] = np.asarray(b).ravel()

    return {
        "w_slabs": tuple(w_slabs),
        "b_slab": jnp.asarray(b_slab),
        "layer_meta": tuple(layer_meta),
        "hidden": hidden, "d3": d3, "d4": d4, "latent": latent,
        "mm_dtype": mm_dtype,
    }


# ----------------------------------------------------------------------------
# Forward wrapper
# ----------------------------------------------------------------------------
def biomedical_feature_extractor(base_features, eps, packed, *, batch_tile=256):
    """Fused trunk / heads / decoder forward. `packed` comes from pack_params()."""
    B, hidden = base_features.shape
    if hidden != packed["hidden"]:
        raise ValueError("base_features width does not match packed params")
    d3, d4, latent = packed["d3"], packed["d4"], packed["latent"]
    mm_dtype = packed["mm_dtype"]
    w_slabs = packed["w_slabs"]
    b_slab = packed["b_slab"]

    # Batch tiling: 16-row alignment (bf16 sublane tiles); >=2 tiles when the batch
    # allows so the "parallel" grid axis shards across both v7x TensorCores; 256-row
    # default tile feeds the 256-wide MXU on v6e/v7x and amortizes per-step overhead.
    batch_tile = max(16, _round_up(batch_tile, 16))
    n_tiles = max(1, _cdiv(B, batch_tile))
    if n_tiles == 1 and B > 16:
        n_tiles = 2
    bt = _round_up(_cdiv(B, n_tiles), 16)
    b_pad = _round_up(B, bt)

    # bf16 activation stream (halves input DMA bytes; matmul inputs are bf16 anyway).
    x = jnp.pad(base_features.astype(mm_dtype), ((0, b_pad - B), (0, 0)))
    # eps stays f32 but is lane-padded to a 128 multiple -> unmasked DMA / vld.
    eps_w = _round_up(latent, 128)
    e = jnp.pad(eps.astype(jnp.float32), ((0, b_pad - B), (0, eps_w - latent)))

    out_total = d4 + 2 * latent + hidden          # z_I | mu | logvar | reconstructed
    out_w = _round_up(out_total, 128)             # lane-dense output slab width

    kernel = functools.partial(
        _fused_mlp_kernel,
        n_wslabs=len(w_slabs), layer_meta=packed["layer_meta"],
        d3=d3, d4=d4, latent=latent, hidden=hidden, out_pad=out_w - out_total)

    param_arrays = (*w_slabs, b_slab)

    def run(param_pipeline_mode):
        extra = {} if param_pipeline_mode is None else {"pipeline_mode": param_pipeline_mode}
        # Constant index_map -> parameter slabs are fetched once and stay VMEM-resident.
        param_specs = [pl.BlockSpec(a.shape, lambda i: (0, 0), **extra)
                       for a in param_arrays]
        return pl.pallas_call(
            kernel,
            out_shape=jax.ShapeDtypeStruct((b_pad, out_w), jnp.float32),
            grid=(b_pad // bt,),
            in_specs=[
                pl.BlockSpec((bt, hidden), lambda i: (i, 0)),   # activations stream
                pl.BlockSpec((bt, eps_w), lambda i: (i, 0)),    # eps stream (lane-dense)
                *param_specs,
            ],
            out_specs=pl.BlockSpec((bt, out_w), lambda i: (i, 0)),
            compiler_params=pltpu.CompilerParams(
                # Independent batch tiles: shards across both TensorCores on v7x.
                dimension_semantics=("parallel",),
            ),
        )(x, e, *param_arrays)

    try:
        # Parameter slabs never change across grid steps -> single-buffer them
        # (halves their resident VMEM; matters at PubMedBERT scale on v7x's 64 MiB).
        out_slab = run(pl.Buffered(1))
    except Exception:  # pragma: no cover - fall back if pipeline_mode is unsupported
        out_slab = run(None)

    # Split the lane-dense output slab back into named outputs (drop padding).
    col = 0

    def take(width):
        nonlocal col
        piece = out_slab[:B, col:col + width]
        col += width
        return piece

    z_i = take(d4)
    mu = take(latent)
    logvar = take(latent)
    rec = take(hidden)

    # Cheap elementwise outputs recomputed here instead of written by the kernel
    # (saves d4 + latent f32 output columns of HBM writeback per row).
    z_v = mu + eps.astype(jnp.float32) * jnp.exp(0.5 * logvar)
    z_c = z_i + z_v

    return {
        "z_I": z_i, "z_V": z_v, "mu": mu, "logvar": logvar,
        "z_combined": z_c, "reconstructed": rec,
        "original_features": base_features,
    }


# ----------------------------------------------------------------------------
# Synthetic parameters / surrogate encoder / pure-JAX reference
# ----------------------------------------------------------------------------
def make_params(key, hidden, d1, d2, d3, d4, latent, dec_hidden):
    """Deterministic synthetic Linear params (weights as [in, out], biases as [out])."""
    shapes = {
        "w1": (hidden, d1), "w2": (d1, d2),
        "wd1": (d2, d3), "wd2": (d3, d4),
        "wmu": (d2, latent), "wlv": (d2, latent),
        "wr1": (d4, dec_hidden), "wr2": (dec_hidden, hidden),
    }
    params = {}
    for name, shape in shapes.items():
        key, sub = jax.random.split(key)
        params[name] = 0.05 * jax.random.normal(sub, shape, jnp.float32)
        key, sub = jax.random.split(key)
        params["b" + name[1:]] = 0.01 * jax.random.normal(sub, (shape[1],), jnp.float32)
    return params


def surrogate_encoder(input_ids, attention_mask, emb_table):
    # TODO(synk): stand-in for the pretrained PubMedBERT encoder (cannot be loaded here).
    full_sequence = emb_table[input_ids] * attention_mask[..., None].astype(jnp.float32)
    cls_representation = full_sequence[:, 0, :]
    return cls_representation, full_sequence


def reference_forward(base_features, eps, params, mm_dtype=jnp.bfloat16):
    """Pure-JAX reference using the same bf16-matmul / f32-accumulate discipline."""
    def lin(h, w, b):
        return jnp.dot(h.astype(mm_dtype), w.astype(mm_dtype),
                       preferred_element_type=jnp.float32) + b

    h1 = jnp.maximum(lin(base_features, params["w1"], params["b1"]), 0.0)
    hs = jnp.maximum(lin(h1, params["w2"], params["b2"]), 0.0)
    d_hid = jnp.maximum(lin(hs, params["wd1"], params["bd1"]), 0.0)
    z_i = lin(d_hid, params["wd2"], params["bd2"])
    mu = lin(hs, params["wmu"], params["bmu"])
    logvar = lin(hs, params["wlv"], params["blv"])
    z_v = mu + eps * jnp.exp(0.5 * logvar)
    z_c = z_i + z_v
    r1 = jnp.maximum(lin(z_c, params["wr1"], params["br1"]), 0.0)
    rec = lin(r1, params["wr2"], params["br2"])
    return {"z_I": z_i, "z_V": z_v, "mu": mu, "logvar": logvar,
            "z_combined": z_c, "reconstructed": rec}


# ----------------------------------------------------------------------------
# Main
# ----------------------------------------------------------------------------
if __name__ == "__main__":
    # Toy shapes: batch=2, seq=8, hidden=32, d1=64, d2=32, d3=32, d4=latent=16.
    B, S, VOCAB = 2, 8, 100
    HIDDEN, D1, D2, D3 = 32, 64, 32, 32
    D4 = LATENT = 16          # the reference forward's z_I + z_V requires d4 == latent
    DEC_HIDDEN = 32           # ReconstructionDecoder hidden_dim (256 in module defaults)
    NAMES = ("z_I", "z_V", "mu", "logvar", "z_combined", "reconstructed")

    key = jax.random.PRNGKey(0)
    k_emb, k_ids, k_eps, k_params, k_ids2, k_eps2 = jax.random.split(key, 6)

    emb_table = 0.1 * jax.random.normal(k_emb, (VOCAB, HIDDEN), jnp.float32)
    input_ids = jax.random.randint(k_ids, (B, S), 0, VOCAB)
    attention_mask = jnp.ones((B, S), jnp.int32)

    params = make_params(k_params, HIDDEN, D1, D2, D3, D4, LATENT, DEC_HIDDEN)
    packed = pack_params(params)        # one-time packing, hoisted out of the forward
    eps = jax.random.normal(k_eps, (B, LATENT), jnp.float32)

    base_features, full_sequence = surrogate_encoder(input_ids, attention_mask, emb_table)

    outputs = biomedical_feature_extractor(base_features, eps, packed)
    outputs["full_sequence"] = full_sequence
    jax.block_until_ready(outputs)

    # Shape checks.
    assert outputs["z_I"].shape == (B, D4)
    assert outputs["z_V"].shape == (B, LATENT)
    assert outputs["mu"].shape == (B, LATENT)
    assert outputs["logvar"].shape == (B, LATENT)
    assert outputs["z_combined"].shape == (B, D4)
    assert outputs["reconstructed"].shape == (B, HIDDEN)
    assert outputs["full_sequence"].shape == (B, S, HIDDEN)

    # Numerical check against the pure-JAX reference (same bf16 matmul inputs).
    ref = reference_forward(base_features, eps, params)
    for name in NAMES:
        np.testing.assert_allclose(np.asarray(outputs[name]), np.asarray(ref[name]),
                                   rtol=2e-3, atol=1e-4)

    # Second run with a batch that exercises the multi-tile "parallel" grid path
    # (2 tiles + zero-padded tail rows), reusing the same packed params.
    B2 = 24
    input_ids2 = jax.random.randint(k_ids2, (B2, S), 0, VOCAB)
    mask2 = jnp.ones((B2, S), jnp.int32)
    base2, _ = surrogate_encoder(input_ids2, mask2, emb_table)
    eps2 = jax.random.normal(k_eps2, (B2, LATENT), jnp.float32)
    out2 = biomedical_feature_extractor(base2, eps2, packed)
    jax.block_until_ready(out2)
    ref2 = reference_forward(base2, eps2, params)
    for name in NAMES:
        np.testing.assert_allclose(np.asarray(out2[name]), np.asarray(ref2[name]),
                                   rtol=2e-3, atol=1e-4)

    print("KERNEL_OK")
</pallas_src>

<mosaic_0001>
module attributes {stable_mosaic.version = 11 : i64} {
  func.func @_fused_mlp_kernel(%arg0: i32, %arg1: memref<16x32xbf16, #tpu.memory_space<vmem>>, %arg2: memref<16x128xf32, #tpu.memory_space<vmem>>, %arg3: memref<208x128xbf16, #tpu.memory_space<vmem>>, %arg4: memref<8x128xf32, #tpu.memory_space<vmem>>, %arg5: memref<16x128xf32, #tpu.memory_space<vmem>>) attributes {dimension_semantics = [#tpu.dimension_semantics<parallel>], iteration_bounds = array<i64: 1>, scalar_prefetch = 0 : i64, scratch_operands = 0 : i64, tpu.core_type = #tpu.core_type<tc>, window_params = [{transform_indices = @transform_0, window_bounds = array<i64: 16, 32>}, {transform_indices = @transform_1, window_bounds = array<i64: 16, 128>}, {pipeline_mode = #tpu.pipeline_mode<synchronous>, transform_indices = @transform_2, window_bounds = array<i64: 208, 128>}, {pipeline_mode = #tpu.pipeline_mode<synchronous>, transform_indices = @transform_3, window_bounds = array<i64: 8, 128>}, {transform_indices = @transform_4, window_bounds = array<i64: 16, 128>}]} {
    %c0 = arith.constant 0 : index
    %c0_0 = arith.constant 0 : index
    %0 = vector.load %arg1[%c0, %c0_0] : memref<16x32xbf16, #tpu.memory_space<vmem>>, vector<16x32xbf16>
    %c0_1 = arith.constant 0 : index
    %c0_2 = arith.constant 0 : index
    %1 = vector.load %arg3[%c0_1, %c0_2] : memref<208x128xbf16, #tpu.memory_space<vmem>>, vector<32x64xbf16>
    %c0_3 = arith.constant 0 : index
    %c0_4 = arith.constant 0 : index
    %2 = vector.load %arg4[%c0_3, %c0_4] : memref<8x128xf32, #tpu.memory_space<vmem>>, vector<1x64xf32>
    %cst = arith.constant dense<0.000000e+00> : vector<16x64xf32>
    %3 = tpu.matmul %0, %1, %cst {dimension_numbers = #tpu.dot_dimension_numbers<[1], [0], [0], [1], [0, 0, 1, 1], [], []>} : vector<16x32xbf16>, vector<32x64xbf16>, vector<16x64xf32> -> vector<16x64xf32>
    %4 = vector.broadcast %2 : vector<1x64xf32> to vector<16x64xf32>
    %5 = arith.addf %3, %4 : vector<16x64xf32>
    %cst_5 = arith.constant 0.000000e+00 : f32
    %6 = vector.broadcast %cst_5 : f32 to vector<16x64xf32>
    %7 = arith.maximumf %5, %6 : vector<16x64xf32>
    %c32 = arith.constant 32 : index
    %c0_6 = arith.constant 0 : index
    %8 = vector.load %arg3[%c32, %c0_6] : memref<208x128xbf16, #tpu.memory_space<vmem>>, vector<64x32xbf16>
    %c1 = arith.constant 1 : index
    %c0_7 = arith.constant 0 : index
    %9 = vector.load %arg4[%c1, %c0_7] : memref<8x128xf32, #tpu.memory_space<vmem>>, vector<1x32xf32>
    %10 = arith.truncf %7 : vector<16x64xf32> to vector<16x64xbf16>
    %cst_8 = arith.constant dense<0.000000e+00> : vector<16x32xf32>
    %11 = tpu.matmul %10, %8, %cst_8 {dimension_numbers = #tpu.dot_dimension_numbers<[1], [0], [0], [1], [0, 0, 1, 1], [], []>} : vector<16x64xbf16>, vector<64x32xbf16>, vector<16x32xf32> -> vector<16x32xf32>
    %12 = vector.broadcast %9 : vector<1x32xf32> to vector<16x32xf32>
    %13 = arith.addf %11, %12 : vector<16x32xf32>
    %cst_9 = arith.constant 0.000000e+00 : f32
    %14 = vector.broadcast %cst_9 : f32 to vector<16x32xf32>
    %15 = arith.maximumf %13, %14 : vector<16x32xf32>
    %c96 = arith.constant 96 : index
    %c0_10 = arith.constant 0 : index
    %16 = vector.load %arg3[%c96, %c0_10] : memref<208x128xbf16, #tpu.memory_space<vmem>>, vector<32x64xbf16>
    %c2 = arith.constant 2 : index
    %c0_11 = arith.constant 0 : index
    %17 = vector.load %arg4[%c2, %c0_11] : memref<8x128xf32, #tpu.memory_space<vmem>>, vector<1x64xf32>
    %18 = arith.truncf %15 : vector<16x32xf32> to vector<16x32xbf16>
    %cst_12 = arith.constant dense<0.000000e+00> : vector<16x64xf32>
    %19 = tpu.matmul %18, %16, %cst_12 {dimension_numbers = #tpu.dot_dimension_numbers<[1], [0], [0], [1], [0, 0, 1, 1], [], []>} : vector<16x32xbf16>, vector<32x64xbf16>, vector<16x64xf32> -> vector<16x64xf32>
    %20 = vector.broadcast %17 : vector<1x64xf32> to vector<16x64xf32>
    %21 = arith.addf %19, %20 : vector<16x64xf32>
    %22 = vector.extract_strided_slice %21 {offsets = [0, 0], sizes = [16, 32], strides = [1, 1]} : vector<16x64xf32> to vector<16x32xf32>
    %cst_13 = arith.constant 0.000000e+00 : f32
    %23 = vector.broadcast %cst_13 : f32 to vector<16x32xf32>
    %24 = arith.maximumf %22, %23 : vector<16x32xf32>
    %25 = vector.extract_strided_slice %21 {offsets = [0, 32], sizes = [16, 16], strides = [1, 1]} : vector<16x64xf32> to vector<16x16xf32>
    %26 = vector.extract_strided_slice %21 {offsets = [0, 48], sizes = [16, 16], strides = [1, 1]} : vector<16x64xf32> to vector<16x16xf32>
    %c128 = arith.constant 128 : index
    %c0_14 = arith.constant 0 : index
    %27 = vector.load %arg3[%c128, %c0_14] : memref<208x128xbf16, #tpu.memory_space<vmem>>, vector<32x16xbf16>
    %c3 = arith.constant 3 : index
    %c0_15 = arith.constant 0 : index
    %28 = vector.load %arg4[%c3, %c0_15] : memref<8x128xf32, #tpu.memory_space<vmem>>, vector<1x16xf32>
    %29 = arith.truncf %24 : vector<16x32xf32> to vector<16x32xbf16>
    %cst_16 = arith.constant dense<0.000000e+00> : vector<16x16xf32>
    %30 = tpu.matmul %29, %27, %cst_16 {dimension_numbers = #tpu.dot_dimension_numbers<[1], [0], [0], [1], [0, 0, 1, 1], [], []>} : vector<16x32xbf16>, vector<32x16xbf16>, vector<16x16xf32> -> vector<16x16xf32>
    %31 = vector.broadcast %28 : vector<1x16xf32> to vector<16x16xf32>
    %32 = arith.addf %30, %31 : vector<16x16xf32>
    %cst_17 = arith.constant 5.000000e-01 : f32
    %33 = vector.broadcast %cst_17 : f32 to vector<16x16xf32>
    %34 = arith.mulf %33, %26 : vector<16x16xf32>
    %35 = math.exp %34 : vector<16x16xf32>
    %c0_18 = arith.constant 0 : index
    %c0_19 = arith.constant 0 : index
    %36 = vector.load %arg2[%c0_18, %c0_19] : memref<16x128xf32, #tpu.memory_space<vmem>>, vector<16x16xf32>
    %37 = arith.mulf %36, %35 : vector<16x16xf32>
    %38 = arith.addf %25, %37 : vector<16x16xf32>
    %39 = arith.addf %32, %38 : vector<16x16xf32>
    %c160 = arith.constant 160 : index
    %c0_20 = arith.constant 0 : index
    %40 = vector.load %arg3[%c160, %c0_20] : memref<208x128xbf16, #tpu.memory_space<vmem>>, vector<16x32xbf16>
    %c4 = arith.constant 4 : index
    %c0_21 = arith.constant 0 : index
    %41 = vector.load %arg4[%c4, %c0_21] : memref<8x128xf32, #tpu.memory_space<vmem>>, vector<1x32xf32>
    %42 = arith.truncf %39 : vector<16x16xf32> to vector<16x16xbf16>
    %cst_22 = arith.constant dense<0.000000e+00> : vector<16x32xf32>
    %43 = tpu.matmul %42, %40, %cst_22 {dimension_numbers = #tpu.dot_dimension_numbers<[1], [0], [0], [1], [0, 0, 1, 1], [], []>} : vector<16x16xbf16>, vector<16x32xbf16>, vector<16x32xf32> -> vector<16x32xf32>
    %44 = vector.broadcast %41 : vector<1x32xf32> to vector<16x32xf32>
    %45 = arith.addf %43, %44 : vector<16x32xf32>
    %cst_23 = arith.constant 0.000000e+00 : f32
    %46 = vector.broadcast %cst_23 : f32 to vector<16x32xf32>
    %47 = arith.maximumf %45, %46 : vector<16x32xf32>
    %c176 = arith.constant 176 : index
    %c0_24 = arith.constant 0 : index
    %48 = vector.load %arg3[%c176, %c0_24] : memref<208x128xbf16, #tpu.memory_space<vmem>>, vector<32x32xbf16>
    %c5 = arith.constant 5 : index
    %c0_25 = arith.constant 0 : index
    %49 = vector.load %arg4[%c5, %c0_25] : memref<8x128xf32, #tpu.memory_space<vmem>>, vector<1x32xf32>
    %50 = arith.truncf %47 : vector<16x32xf32> to vector<16x32xbf16>
    %cst_26 = arith.constant dense<0.000000e+00> : vector<16x32xf32>
    %51 = tpu.matmul %50, %48, %cst_26 {dimension_numbers = #tpu.dot_dimension_numbers<[1], [0], [0], [1], [0, 0, 1, 1], [], []>} : vector<16x32xbf16>, vector<32x32xbf16>, vector<16x32xf32> -> vector<16x32xf32>
    %52 = vector.broadcast %49 : vector<1x32xf32> to vector<16x32xf32>
    %53 = arith.addf %51, %52 : vector<16x32xf32>
    %cst_27 = arith.constant 0.000000e+00 : f32
    %54 = vector.broadcast %cst_27 : f32 to vector<16x48xf32>
    %55 = tpu.concatenate %32, %25, %26, %53, %54 in 1 : vector<16x16xf32>, vector<16x16xf32>, vector<16x16xf32>, vector<16x32xf32>, vector<16x48xf32> -> vector<16x128xf32>
    %c0_28 = arith.constant 0 : index
    %c0_29 = arith.constant 0 : index
    %56 = vector.load %arg5[%c0_28, %c0_29] : memref<16x128xf32, #tpu.memory_space<vmem>>, vector<16x128xf32>
    tpu.vector_store %arg5[%c0_28, %c0_29], %55 {strides = array<i32>} : memref<16x128xf32, #tpu.memory_space<vmem>>, vector<16x128xf32>,
    return
  }
  func.func @transform_0(%arg0: i32) -> (i32, i32) {
    %c0_i32 = arith.constant 0 : i32
    %c0_i32_0 = arith.constant 0 : i32
    return %arg0, %c0_i32 : i32, i32
  }
  func.func @transform_1(%arg0: i32) -> (i32, i32) {
    %c0_i32 = arith.constant 0 : i32
    %c0_i32_0 = arith.constant 0 : i32
    return %arg0, %c0_i32 : i32, i32
  }
  func.func @transform_2(%arg0: i32) -> (i32, i32) {
    %c0_i32 = arith.constant 0 : i32
    %c0_i32_0 = arith.constant 0 : i32
    %c0_i32_1 = arith.constant 0 : i32
    return %c0_i32, %c0_i32_0 : i32, i32
  }
  func.func @transform_3(%arg0: i32) -> (i32, i32) {
    %c0_i32 = arith.constant 0 : i32
    %c0_i32_0 = arith.constant 0 : i32
    %c0_i32_1 = arith.constant 0 : i32
    return %c0_i32, %c0_i32_0 : i32, i32
  }
  func.func @transform_4(%arg0: i32) -> (i32, i32) {
    %c0_i32 = arith.constant 0 : i32
    %c0_i32_0 = arith.constant 0 : i32
    return %arg0, %c0_i32 : i32, i32
  }
}

module attributes {stable_mosaic.version = 11 : i64} {
  func.func @_fused_mlp_kernel(%arg0: i32, %arg1: memref<16x32xbf16, #tpu.memory_space<vmem>>, %arg2: memref<16x128xf32, #tpu.memory_space<vmem>>, %arg3: memref<208x128xbf16, #tpu.memory_space<vmem>>, %arg4: memref<8x128xf32, #tpu.memory_space<vmem>>, %arg5: memref<16x128xf32, #tpu.memory_space<vmem>>) attributes {dimension_semantics = [#tpu.dimension_semantics<parallel>], iteration_bounds = array<i64: 1>, scalar_prefetch = 0 : i64, scratch_operands = 0 : i64, tpu.core_type = #tpu.core_type<tc>, window_params = [{transform_indices = @transform_0, window_bounds = array<i64: 16, 32>}, {transform_indices = @transform_1, window_bounds = array<i64: 16, 128>}, {pipeline_mode = #tpu.pipeline_mode<synchronous>, transform_indices = @transform_2, window_bounds = array<i64: 208, 128>}, {pipeline_mode = #tpu.pipeline_mode<synchronous>, transform_indices = @transform_3, window_bounds = array<i64: 8, 128>}, {transform_indices = @transform_4, window_bounds = array<i64: 16, 128>}]} {
    %c0 = arith.constant 0 : index
    %c0_0 = arith.constant 0 : index
    %0 = vector.load %arg1[%c0, %c0_0] : memref<16x32xbf16, #tpu.memory_space<vmem>>, vector<16x32xbf16>
    %c0_1 = arith.constant 0 : index
    %c0_2 = arith.constant 0 : index
    %1 = vector.load %arg3[%c0_1, %c0_2] : memref<208x128xbf16, #tpu.memory_space<vmem>>, vector<32x64xbf16>
    %c0_3 = arith.constant 0 : index
    %c0_4 = arith.constant 0 : index
    %2 = vector.load %arg4[%c0_3, %c0_4] : memref<8x128xf32, #tpu.memory_space<vmem>>, vector<1x64xf32>
    %cst = arith.constant dense<0.000000e+00> : vector<16x64xf32>
    %3 = tpu.matmul %0, %1, %cst {dimension_numbers = #tpu.dot_dimension_numbers<[1], [0], [0], [1], [0, 0, 1, 1], [], []>} : vector<16x32xbf16>, vector<32x64xbf16>, vector<16x64xf32> -> vector<16x64xf32>
    %4 = vector.broadcast %2 : vector<1x64xf32> to vector<16x64xf32>
    %5 = arith.addf %3, %4 : vector<16x64xf32>
    %cst_5 = arith.constant 0.000000e+00 : f32
    %6 = vector.broadcast %cst_5 : f32 to vector<16x64xf32>
    %7 = arith.maximumf %5, %6 : vector<16x64xf32>
    %c32 = arith.constant 32 : index
    %c0_6 = arith.constant 0 : index
    %8 = vector.load %arg3[%c32, %c0_6] : memref<208x128xbf16, #tpu.memory_space<vmem>>, vector<64x32xbf16>
    %c1 = arith.constant 1 : index
    %c0_7 = arith.constant 0 : index
    %9 = vector.load %arg4[%c1, %c0_7] : memref<8x128xf32, #tpu.memory_space<vmem>>, vector<1x32xf32>
    %10 = arith.truncf %7 : vector<16x64xf32> to vector<16x64xbf16>
    %cst_8 = arith.constant dense<0.000000e+00> : vector<16x32xf32>
    %11 = tpu.matmul %10, %8, %cst_8 {dimension_numbers = #tpu.dot_dimension_numbers<[1], [0], [0], [1], [0, 0, 1, 1], [], []>} : vector<16x64xbf16>, vector<64x32xbf16>, vector<16x32xf32> -> vector<16x32xf32>
    %12 = vector.broadcast %9 : vector<1x32xf32> to vector<16x32xf32>
    %13 = arith.addf %11, %12 : vector<16x32xf32>
    %cst_9 = arith.constant 0.000000e+00 : f32
    %14 = vector.broadcast %cst_9 : f32 to vector<16x32xf32>
    %15 = arith.maximumf %13, %14 : vector<16x32xf32>
    %c96 = arith.constant 96 : index
    %c0_10 = arith.constant 0 : index
    %16 = vector.load %arg3[%c96, %c0_10] : memref<208x128xbf16, #tpu.memory_space<vmem>>, vector<32x64xbf16>
    %c2 = arith.constant 2 : index
    %c0_11 = arith.constant 0 : index
    %17 = vector.load %arg4[%c2, %c0_11] : memref<8x128xf32, #tpu.memory_space<vmem>>, vector<1x64xf32>
    %18 = arith.truncf %15 : vector<16x32xf32> to vector<16x32xbf16>
    %cst_12 = arith.constant dense<0.000000e+00> : vector<16x64xf32>
    %19 = tpu.matmul %18, %16, %cst_12 {dimension_numbers = #tpu.dot_dimension_numbers<[1], [0], [0], [1], [0, 0, 1, 1], [], []>} : vector<16x32xbf16>, vector<32x64xbf16>, vector<16x64xf32> -> vector<16x64xf32>
    %20 = vector.broadcast %17 : vector<1x64xf32> to vector<16x64xf32>
    %21 = arith.addf %19, %20 : vector<16x64xf32>
    %22 = vector.extract_strided_slice %21 {offsets = [0, 0], sizes = [16, 32], strides = [1, 1]} : vector<16x64xf32> to vector<16x32xf32>
    %cst_13 = arith.constant 0.000000e+00 : f32
    %23 = vector.broadcast %cst_13 : f32 to vector<16x32xf32>
    %24 = arith.maximumf %22, %23 : vector<16x32xf32>
    %25 = vector.extract_strided_slice %21 {offsets = [0, 32], sizes = [16, 16], strides = [1, 1]} : vector<16x64xf32> to vector<16x16xf32>
    %26 = vector.extract_strided_slice %21 {offsets = [0, 48], sizes = [16, 16], strides = [1, 1]} : vector<16x64xf32> to vector<16x16xf32>
    %c128 = arith.constant 128 : index
    %c0_14 = arith.constant 0 : index
    %27 = vector.load %arg3[%c128, %c0_14] : memref<208x128xbf16, #tpu.memory_space<vmem>>, vector<32x16xbf16>
    %c3 = arith.constant 3 : index
    %c0_15 = arith.constant 0 : index
    %28 = vector.load %arg4[%c3, %c0_15] : memref<8x128xf32, #tpu.memory_space<vmem>>, vector<1x16xf32>
    %29 = arith.truncf %24 : vector<16x32xf32> to vector<16x32xbf16>
    %cst_16 = arith.constant dense<0.000000e+00> : vector<16x16xf32>
    %30 = tpu.matmul %29, %27, %cst_16 {dimension_numbers = #tpu.dot_dimension_numbers<[1], [0], [0], [1], [0, 0, 1, 1], [], []>} : vector<16x32xbf16>, vector<32x16xbf16>, vector<16x16xf32> -> vector<16x16xf32>
    %31 = vector.broadcast %28 : vector<1x16xf32> to vector<16x16xf32>
    %32 = arith.addf %30, %31 : vector<16x16xf32>
    %cst_17 = arith.constant 5.000000e-01 : f32
    %33 = vector.broadcast %cst_17 : f32 to vector<16x16xf32>
    %34 = arith.mulf %33, %26 : vector<16x16xf32>
    %35 = math.exp %34 : vector<16x16xf32>
    %c0_18 = arith.constant 0 : index
    %c0_19 = arith.constant 0 : index
    %36 = vector.load %arg2[%c0_18, %c0_19] : memref<16x128xf32, #tpu.memory_space<vmem>>, vector<16x16xf32>
    %37 = arith.mulf %36, %35 : vector<16x16xf32>
    %38 = arith.addf %25, %37 : vector<16x16xf32>
    %39 = arith.addf %32, %38 : vector<16x16xf32>
    %c160 = arith.constant 160 : index
    %c0_20 = arith.constant 0 : index
    %40 = vector.load %arg3[%c160, %c0_20] : memref<208x128xbf16, #tpu.memory_space<vmem>>, vector<16x32xbf16>
    %c4 = arith.constant 4 : index
    %c0_21 = arith.constant 0 : index
    %41 = vector.load %arg4[%c4, %c0_21] : memref<8x128xf32, #tpu.memory_space<vmem>>, vector<1x32xf32>
    %42 = arith.truncf %39 : vector<16x16xf32> to vector<16x16xbf16>
    %cst_22 = arith.constant dense<0.000000e+00> : vector<16x32xf32>
    %43 = tpu.matmul %42, %40, %cst_22 {dimension_numbers = #tpu.dot_dimension_numbers<[1], [0], [0], [1], [0, 0, 1, 1], [], []>} : vector<16x16xbf16>, vector<16x32xbf16>, vector<16x32xf32> -> vector<16x32xf32>
    %44 = vector.broadcast %41 : vector<1x32xf32> to vector<16x32xf32>
    %45 = arith.addf %43, %44 : vector<16x32xf32>
    %cst_23 = arith.constant 0.000000e+00 : f32
    %46 = vector.broadcast %cst_23 : f32 to vector<16x32xf32>
    %47 = arith.maximumf %45, %46 : vector<16x32xf32>
    %c176 = arith.constant 176 : index
    %c0_24 = arith.constant 0 : index
    %48 = vector.load %arg3[%c176, %c0_24] : memref<208x128xbf16, #tpu.memory_space<vmem>>, vector<32x32xbf16>
    %c5 = arith.constant 5 : index
    %c0_25 = arith.constant 0 : index
    %49 = vector.load %arg4[%c5, %c0_25] : memref<8x128xf32, #tpu.memory_space<vmem>>, vector<1x32xf32>
    %50 = arith.truncf %47 : vector<16x32xf32> to vector<16x32xbf16>
    %cst_26 = arith.constant dense<0.000000e+00> : vector<16x32xf32>
    %51 = tpu.matmul %50, %48, %cst_26 {dimension_numbers = #tpu.dot_dimension_numbers<[1], [0], [0], [1], [0, 0, 1, 1], [], []>} : vector<16x32xbf16>, vector<32x32xbf16>, vector<16x32xf32> -> vector<16x32xf32>
    %52 = vector.broadcast %49 : vector<1x32xf32> to vector<16x32xf32>
    %53 = arith.addf %51, %52 : vector<16x32xf32>
    %cst_27 = arith.constant 0.000000e+00 : f32
    %54 = vector.broadcast %cst_27 : f32 to vector<16x48xf32>
    %55 = tpu.concatenate %32, %25, %26, %53, %54 in 1 : vector<16x16xf32>, vector<16x16xf32>, vector<16x16xf32>, vector<16x32xf32>, vector<16x48xf32> -> vector<16x128xf32>
    %c0_28 = arith.constant 0 : index
    %c0_29 = arith.constant 0 : index
    %56 = vector.load %arg5[%c0_28, %c0_29] : memref<16x128xf32, #tpu.memory_space<vmem>>, vector<16x128xf32>
    tpu.vector_store %arg5[%c0_28, %c0_29], %55 {strides = array<i32>} : memref<16x128xf32, #tpu.memory_space<vmem>>, vector<16x128xf32>,
    return
  }
  func.func @transform_0(%arg0: i32) -> (i32, i32) {
    %c0_i32 = arith.constant 0 : i32
    %c0_i32_0 = arith.constant 0 : i32
    return %arg0, %c0_i32 : i32, i32
  }
  func.func @transform_1(%arg0: i32) -> (i32, i32) {
    %c0_i32 = arith.constant 0 : i32
    %c0_i32_0 = arith.constant 0 : i32
    return %arg0, %c0_i32 : i32, i32
  }
  func.func @transform_2(%arg0: i32) -> (i32, i32) {
    %c0_i32 = arith.constant 0 : i32
    %c0_i32_0 = arith.constant 0 : i32
    %c0_i32_1 = arith.constant 0 : i32
    return %c0_i32, %c0_i32_0 : i32, i32
  }
  func.func @transform_3(%arg0: i32) -> (i32, i32) {
    %c0_i32 = arith.constant 0 : i32
    %c0_i32_0 = arith.constant 0 : i32
    %c0_i32_1 = arith.constant 0 : i32
    return %c0_i32, %c0_i32_0 : i32, i32
  }
  func.func @transform_4(%arg0: i32) -> (i32, i32) {
    %c0_i32 = arith.constant 0 : i32
    %c0_i32_0 = arith.constant 0 : i32
    return %arg0, %c0_i32 : i32, i32
  }
}

</mosaic_0001>

<bundles_post_ra>
// kernel: tpu_custom_call.1
= control target key start
LH: loop header
LB: loop body
LE: loop exit
PB: predicated region body
PF: predicated region fallthrough
CT: control target
= control target key end

     0   :  { %9 = vsyncpa [#allocation3], 0  ;;  %s707_s0 = inlined_call_operand.hbm [shape: bf16[16,32], index: 0, kind: input, shape index: {}]   ;;  %s708_s1 = inlined_call_operand.hbm [shape: f32[16,128], index: 1, kind: input, shape index: {}]   ;;  %s709_s2 = inlined_call_operand.hbm [shape: bf16[208,128], index: 2, kind: input, shape index: {}]   ;;  %s710_s3 = inlined_call_operand.hbm [shape: f32[8,128], index: 3, kind: input, shape index: {}]   ;;  %s711_s4 = inlined_call_operand.hbm [shape: f32[16,128], index: 4, kind: output, shape index: {}]  }
   0x1   :  { %10 = vsyncpa [#allocation6], 0 }
   0x2   :  { %11 = vsyncpa [#allocation9], 0  ;;  %s30_s17 = sshll.u32 %s708_s1, 4  ;;  %s31_s17 = int_to_ptr.hbm [resolvable:$true] %s30_s17 }
   0x3   :  { %12 = vsyncpa [#allocation4], 0  ;;  %s636_s18 = smov [#allocation5]   ;;  %s17_s22 = sshll.u32 %s707_s0, 4  ;;  %s18_s22 = int_to_ptr.hbm [resolvable:$true] %s17_s22 }
   0x4   :  { %s32_s19 = sshll.u32 %s636_s18, 4  ;;  %s637_s23 = smov 128   ;;  %s33_s19 = int_to_ptr.vmem [resolvable:$true] %s32_s19 }
   0x5   :  { %s638_s24 = smov 8   ;;  %s639_s25 = smov [#allocation2]  }
   0x6   :  { %38 = dma.hbm_to_vmem [thread:$0]  %s31_s17, 256, %s33_s19, [#allocation6], %s637_s23, %s637_s23, %s638_s24  }
   0x7   :  { %s19_s26 = sshll.u32 %s639_s25, 4  ;;  %s640_s1 = smov 64   ;;  %s20_s26 = int_to_ptr.vmem [resolvable:$true] %s19_s26 }
   0x8   :  { %s641_s27 = smov 4   ;;  %s43_s30 = sshll.u32 %s709_s2, 4  ;;  %s44_s30 = int_to_ptr.hbm [resolvable:$true] %s43_s30 }
   0x9   :  { %25 = dma.hbm_to_vmem [thread:$0]  %s18_s22, 128, %s20_s26, [#allocation3], %s640_s1, %s640_s1, %s641_s27  }
   0xa   :  { %s642_s5 = smov [#allocation7]   ;;  %s57_s8 = sshll.u32 %s710_s3, 4  ;;  %s58_s8 = int_to_ptr.hbm [resolvable:$true] %s57_s8 }
   0xb   :  { %s45_s0 = sshll.u32 %s642_s5, 4  ;;  %s643_s9 = smov [#allocation8]   ;;  %s46_s0 = int_to_ptr.vmem [resolvable:$true] %s45_s0 }
   0xc   :  { %51 = dma.hbm_to_vmem [thread:$0]  %s44_s30, 1664, %s46_s0, [#allocation6], %s640_s1, %s640_s1, %s641_s27  }
   0xd   :  { %s59_s10 = sshll.u32 %s643_s9, 4  ;;  %s60_s10 = int_to_ptr.vmem [resolvable:$true] %s59_s10 }
   0xe   :  { %62 = dma.hbm_to_vmem [thread:$0]  %s58_s8, 128, %s60_s10, [#allocation9]  }
   0xf   :  { %628 = dma.done.wait [#allocation3], 128  }
  0x10   :  { %629 = vsyncadd [#allocation3], 4294967168 }
  0x11   :  { %630 = dma.done.wait [#allocation6], 1920  }
  0x12   :  { %631 = vsyncadd [#allocation6], 4294965376 }
  0x13   :  { %632 = dma.done.wait [#allocation9], 128  }
  0x14   :  { %633 = vsyncadd [#allocation9], 4294967168  ;;  %v472_v0 = vld [vmem:[#allocation7 + $0x8] sm:$0xff]  ;;  %v471_v1 = vld [vmem:[#allocation7] sm:$0xff]  ;;  %vm105_vm0 = vcmask 261120   ;;  %vm160_vm1 = vcmask 523264  }
  0x15   :  { %115 = vmatpush.bf16.msra.mxu0 %v472_v0  ;;  %v470_v2 = vld [vmem:[#allocation2] sm:$0xff]  ;;  %v475_v4 = vld [vmem:[#allocation7 + $0x20] sm:$0xff]  ;;  %v474_v5 = vld [vmem:[#allocation7 + $0x18] sm:$0xff]  ;;  %s644_s2 = smov 80   ;;  %s645_s3 = smov 112   ;;  %vm303_vm2 = vcmask 130048  }
  0x16   :  { %v476_v3 = vld [vmem:[#allocation7 + $0x28] sm:$0xff]  ;;  %v473_v6 = vld [vmem:[#allocation7 + $0x10] sm:$0xff]  ;;  %v478_v15 = vld [vmem:[#allocation7 + $0x38] sm:$0xff]  ;;  %s646_s11 = smov 32   ;;  %s647_s12 = smov 96   ;;  %vm379_vm3 = vcmask 392192  }
  0x17   :  { %168 = vmatpush.bf16.msra.mxu1 %v476_v3  ;;  %v498_v8 = vld [vmem:[#allocation8] ss:$0 sm:$0xff]  ;;  %208 = vmatpush.bf16.msra.mxu2 %v478_v15  ;;  %v477_v16 = vld [vmem:[#allocation7 + $0x30] sm:$0xff]  ;;  %v499_v18 = vld [vmem:[#allocation8 + $0x1] ss:$0 sm:$0xff]  ;;  %s648_s13 = smov 48  }
  0x18   :  { %v480_v25 = vld [vmem:[#allocation7 + $0x48] sm:$0xff]  ;;  %v479_v26 = vld [vmem:[#allocation7 + $0x40] sm:$0xff]  ;;  %v260_v41 = vld [vmem:[#allocation5] sm:$0xff]  ;;  %vm382_vm4 = vcmask 654336   ;;  %s649_s14 = smov [#allocation10]   ;;  %s393_s18 = sshll.u32 %s711_s4, 4  ;;  %s394_s18 = int_to_ptr.hbm [resolvable:$true] %s393_s18 }
  0x19   :  { %116 = vmatpush.bf16.msra.mxu0 %v471_v1  ;;  %246 = vmatpush.bf16.msra.mxu3 %v480_v25  ;;  %v500_v27 = vld [vmem:[#allocation8 + $0x2] ss:$0 sm:$0xff]  ;;  %v261_v44 = vld [vmem:[#allocation5 + $0x8] sm:$0xff]  ;;  %v481_v47 = vld [vmem:[#allocation7 + $0x50] sm:$0xff]  ;;  %s391_s15 = sshll.u32 %s649_s14, 4  ;;  %s392_s15 = int_to_ptr.vmem [resolvable:$true] %s391_s15 }
  0x1a   :  { %v483_v52 = vld [vmem:[#allocation7 + $0x60] sm:$0xff]  ;;  %v501_v55 = vld [vmem:[#allocation8 + $0x3] ss:$0 sm:$0xff]  ;;  %v482_v63 = vld [vmem:[#allocation7 + $0x58] sm:$0xff] }
  0x1b   :  { %169 = vmatpush.bf16.msra.mxu1 %v475_v4  ;;  %209 = vmatpush.bf16.msra.mxu2 %v477_v16  ;;  %v502_v1 = vld [vmem:[#allocation8 + $0x4] ss:$0 sm:$0xff] }
  0x1c   :  { %420 = vmatmul.msk.bf16.vlgmr.msra.gmra.mxu0 %vm105_vm0, %v470_v2 }
  0x1d   :  { %247 = vmatpush.bf16.msra.mxu3 %v479_v26  ;;  %314 = vmatpush.bf16.msrb.mxu0 %v481_v47 }
  0x1f   :  { %170 = vmatpush.bf16.msra.mxu1 %v474_v5  ;;  %351 = vmatpush.bf16.msrb.mxu2 %v483_v52 }
  0x23   :  { %171 = vmatpush.bf16.msra.mxu1 %v473_v6  ;;  %352 = vmatpush.bf16.msrb.mxu2 %v482_v63 }
  0x99   :  { %v118_v7 = vpop.f32.mrf.mxu0 }
  0x9a   :  { %v119_v9 = vadd.f32 %v498_v8, %v118_v7 }
  0x9c   :  { %v123_v12 = vmax.f32 %v119_v9, 0.0 }
  0xa1   :  { %v120_v10 = vpop.f32.mrf.mxu0 }
  0xa2   :  { %v121_v11 = vadd.f32 %v498_v8, %v120_v10  ;;  %v503_v8 = vld [vmem:[#allocation8 + $0x5] ss:$0 sm:$0xff] }
  0xa4   :  { %v124_v13 = vmax.f32 %v121_v11, 0.0 }
  0xa6   :  { %v134_v14 = vpack.c.bf16 %v124_v13, %v123_v12 }
  0xa8   :  { %437 = vmatmul.msk.bf16.vlgmr.msra.gmra.mxu1 %vm160_vm1, %v134_v14 }
 0x125   :  { %v173_v17 = vpop.f32.mrf.mxu1 }
 0x126   :  { %v174_v19 = vadd.f32 %v499_v18, %v173_v17 }
 0x128   :  { %v178_v22 = vmax.f32 %v174_v19, 0.0 }
 0x12d   :  { %v175_v20 = vpop.f32.mrf.mxu1 }
 0x12e   :  { %v176_v21 = vadd.f32 %v499_v18, %v175_v20 }
 0x130   :  { %v179_v23 = vmax.f32 %v176_v21, 0.0 }
 0x132   :  { %v185_v24 = vpack.c.bf16 %v179_v23, %v178_v22 }
 0x134   :  { %446 = vmatmul.msk.bf16.vlgmr.msra.gmra.mxu2 %vm105_vm0, %v185_v24 }
 0x1b7   :  { %v211_v28 = vpop.f32.mrf.mxu2 }
 0x1b8   :  { %v212_v29 = vadd.f32 %v500_v27, %v211_v28 }
 0x1ba   :  { %v254_v30 = vmul.f32 0.5, %v212_v29  ;;  %v216_v35 = vmax.f32 %v212_v29, 0.0 }
 0x1bc   :  { %v256_v31 = vmul.f32 1.442695, %v254_v30 }
 0x1be   :  { %504 = vpow2.f32 %v256_v31 }
 0x1bf   :  { %v213_v32 = vpop.f32.mrf.mxu2 }
 0x1c0   :  { %v214_v33 = vadd.f32 %v500_v27, %v213_v32 }
 0x1c2   :  { %v255_v34 = vmul.f32 0.5, %v214_v33  ;;  %v217_v36 = vmax.f32 %v214_v33, 0.0 }
 0x1c4   :  { %v505_v37 = vpop.eup %504  ;;  %v258_v38 = vmul.f32 1.442695, %v255_v34  ;;  %v223_v39 = vpack.c.bf16 %v217_v36, %v216_v35 }
 0x1c5   :  { %264 = vrot.lane.b32.xlu0 %v505_v37, %s644_s2 }
 0x1c6   :  { %506 = vpow2.f32 %v258_v38  ;;  %455 = vmatmul.msk.bf16.vlgmr.msra.gmra.mxu3 %vm105_vm0, %v223_v39 }
 0x1cc   :  { %v507_v40 = vpop.eup %506 }
 0x1cd   :  { %266 = vrot.lane.b32.xlu0 %v507_v40, %s644_s2 }
 0x1d5   :  { %361 = vrot.lane.b32.xlu0 %v212_v29, %s645_s3 }
 0x237   :  { %v265_v42 = vpop.permute.xlu0 %264 }
 0x238   :  { %v270_v43 = vmul.f32 %v265_v42, %v260_v41 }
 0x23a   :  { %274 = vrot.lane.b32.xlu1 %v270_v43, %s646_s11 }
 0x23f   :  { %v267_v45 = vpop.permute.xlu0 %266 }
 0x240   :  { %v271_v46 = vmul.f32 %v267_v45, %v261_v44 }
 0x242   :  { %276 = vrot.lane.b32.xlu1 %v271_v46, %s646_s11 }
 0x247   :  { %v362_v13 = vpop.permute.xlu0 %361 }
 0x249   :  { %v249_v53 = vpop.f32.mrf.mxu3 }
 0x24a   :  { %363 = vrot.lane.b32.xlu1 %v214_v33, %s645_s3  ;;  %v250_v57 = vadd.f32 %v501_v55, %v249_v53 }
 0x24c   :  { %v375_v14 = vsel %vm303_vm2, %v250_v57, %v362_v13 }
 0x24d   :  { %v377_v15 = vsel %vm105_vm0, %v375_v14, %v362_v13 }
 0x251   :  { %v251_v56 = vpop.f32.mrf.mxu3 }
 0x252   :  { %v252_v58 = vadd.f32 %v501_v55, %v251_v56 }
 0x2ac   :  { %v275_v48 = vpop.permute.xlu1 %274 }
 0x2ad   :  { %v280_v49 = vadd.f32 %v275_v48, %v212_v29 }
 0x2af   :  { %284 = vrot.lane.b32.xlu2 %v280_v49, %s647_s12 }
 0x2b4   :  { %v277_v50 = vpop.permute.xlu1 %276 }
 0x2b5   :  { %v281_v51 = vadd.f32 %v277_v50, %v214_v33 }
 0x2b7   :  { %286 = vrot.lane.b32.xlu2 %v281_v51, %s647_s12 }
 0x2bc   :  { %v364_v19 = vpop.permute.xlu1 %363 }
 0x2bd   :  { %v376_v20 = vsel %vm303_vm2, %v252_v58, %v364_v19 }
 0x2be   :  { %v378_v21 = vsel %vm105_vm0, %v376_v20, %v364_v19 }
 0x309   :  { %v285_v54 = vpop.permute.xlu2 %284 }
 0x30a   :  { %v290_v60 = vadd.f32 %v285_v54, %v250_v57 }
 0x311   :  { %v287_v59 = vpop.permute.xlu2 %286 }
 0x312   :  { %v291_v61 = vadd.f32 %v287_v59, %v252_v58 }
 0x314   :  { %v295_v62 = vpack.c.bf16 %v291_v61, %v290_v60 }
 0x316   :  { %460 = vmatmul.msk.bf16.vlgmr.msrb.gmra.mxu0 %vm303_vm2, %v295_v62 }
 0x393   :  { %v316_v0 = vpop.f32.mrf.mxu0 }
 0x394   :  { %v317_v2 = vadd.f32 %v502_v1, %v316_v0 }
 0x396   :  { %v321_v5 = vmax.f32 %v317_v2, 0.0 }
 0x39b   :  { %v318_v3 = vpop.f32.mrf.mxu0 }
 0x39c   :  { %v319_v4 = vadd.f32 %v502_v1, %v318_v3 }
 0x39e   :  { %v322_v6 = vmax.f32 %v319_v4, 0.0 }
 0x3a0   :  { %v328_v7 = vpack.c.bf16 %v322_v6, %v321_v5 }
 0x3a2   :  { %469 = vmatmul.msk.bf16.vlgmr.msrb.gmra.mxu2 %vm105_vm0, %v328_v7 }
 0x425   :  { %v354_v9 = vpop.f32.mrf.mxu2 }
 0x426   :  { %v355_v10 = vadd.f32 %v503_v8, %v354_v9 }
 0x428   :  { %369 = vrot.lane.b32.xlu2 %v355_v10, %s648_s13 }
 0x42d   :  { %v356_v11 = vpop.f32.mrf.mxu2 }
 0x42e   :  { %v357_v12 = vadd.f32 %v503_v8, %v356_v11 }
 0x430   :  { %371 = vrot.lane.b32.xlu0 %v357_v12, %s648_s13 }
 0x482   :  { %v370_v16 = vpop.permute.xlu2 %369 }
 0x483   :  { %v380_v17 = vsel %vm379_vm3, %v377_v15, %v370_v16 }
 0x484   :  { %v383_v18 = vsel %vm382_vm4, %v380_v17, 0.0 }
 0x485   :  { %385 = vst [vmem:[#allocation10] sm:$0xff] %v383_v18 }
 0x4a2   :  { %v372_v22 = vpop.permute.xlu0 %371 }
 0x4a3   :  { %v381_v23 = vsel %vm379_vm3, %v378_v21, %v372_v22 }
 0x4a4   :  { %v384_v24 = vsel %vm382_vm4, %v381_v23, 0.0 }
 0x4a5   :  { %386 = vst [vmem:[#allocation10 + $0x8] sm:$0xff] %v384_v24 }
 0x4a6   :  { %399 = dma.vmem_to_hbm [thread:$0]  %s392_s15, 256, %s394_s18, [#allocation4], %s637_s23, %s637_s23, %s638_s24  }
 0x4a7   :  { %634 = dma.done.wait [#allocation4], 256  }
 0x4a8   :  { %635 = vsyncadd [#allocation4], 4294967040 }
 0x4a9   :  { %404 = vsyncpa [#allocation3], 1 }
 0x4aa   :  { %405 = vsyncpa [#allocation6], 1 }
 0x4ab   :  { %406 = vsyncpa [#allocation9], 1 }
 0x4ac   :  { %407 = vsyncpa [#allocation4], 1 }

// kernel: tpu_custom_call.1
= control target key start
LH: loop header
LB: loop body
LE: loop exit
PB: predicated region body
PF: predicated region fallthrough
CT: control target
= control target key end

     0   :  { %9 = vsyncpa [#allocation3], 0  ;;  %s707_s0 = inlined_call_operand.hbm [shape: bf16[16,32], index: 0, kind: input, shape index: {}]   ;;  %s708_s1 = inlined_call_operand.hbm [shape: f32[16,128], index: 1, kind: input, shape index: {}]   ;;  %s709_s2 = inlined_call_operand.hbm [shape: bf16[208,128], index: 2, kind: input, shape index: {}]   ;;  %s710_s3 = inlined_call_operand.hbm [shape: f32[8,128], index: 3, kind: input, shape index: {}]   ;;  %s711_s4 = inlined_call_operand.hbm [shape: f32[16,128], index: 4, kind: output, shape index: {}]  }
   0x1   :  { %10 = vsyncpa [#allocation6], 0 }
   0x2   :  { %11 = vsyncpa [#allocation9], 0  ;;  %s30_s17 = sshll.u32 %s708_s1, 4  ;;  %s31_s17 = int_to_ptr.hbm [resolvable:$true] %s30_s17 }
   0x3   :  { %12 = vsyncpa [#allocation4], 0  ;;  %s636_s18 = smov [#allocation5]   ;;  %s17_s22 = sshll.u32 %s707_s0, 4  ;;  %s18_s22 = int_to_ptr.hbm [resolvable:$true] %s17_s22 }
   0x4   :  { %s32_s19 = sshll.u32 %s636_s18, 4  ;;  %s637_s23 = smov 128   ;;  %s33_s19 = int_to_ptr.vmem [resolvable:$true] %s32_s19 }
   0x5   :  { %s638_s24 = smov 8   ;;  %s639_s25 = smov [#allocation2]  }
   0x6   :  { %38 = dma.hbm_to_vmem [thread:$0]  %s31_s17, 256, %s33_s19, [#allocation6], %s637_s23, %s637_s23, %s638_s24  }
   0x7   :  { %s19_s26 = sshll.u32 %s639_s25, 4  ;;  %s640_s1 = smov 64   ;;  %s20_s26 = int_to_ptr.vmem [resolvable:$true] %s19_s26 }
   0x8   :  { %s641_s27 = smov 4   ;;  %s43_s30 = sshll.u32 %s709_s2, 4  ;;  %s44_s30 = int_to_ptr.hbm [resolvable:$true] %s43_s30 }
   0x9   :  { %25 = dma.hbm_to_vmem [thread:$0]  %s18_s22, 128, %s20_s26, [#allocation3], %s640_s1, %s640_s1, %s641_s27  }
   0xa   :  { %s642_s5 = smov [#allocation7]   ;;  %s57_s8 = sshll.u32 %s710_s3, 4  ;;  %s58_s8 = int_to_ptr.hbm [resolvable:$true] %s57_s8 }
   0xb   :  { %s45_s0 = sshll.u32 %s642_s5, 4  ;;  %s643_s9 = smov [#allocation8]   ;;  %s46_s0 = int_to_ptr.vmem [resolvable:$true] %s45_s0 }
   0xc   :  { %51 = dma.hbm_to_vmem [thread:$0]  %s44_s30, 1664, %s46_s0, [#allocation6], %s640_s1, %s640_s1, %s641_s27  }
   0xd   :  { %s59_s10 = sshll.u32 %s643_s9, 4  ;;  %s60_s10 = int_to_ptr.vmem [resolvable:$true] %s59_s10 }
   0xe   :  { %62 = dma.hbm_to_vmem [thread:$0]  %s58_s8, 128, %s60_s10, [#allocation9]  }
   0xf   :  { %628 = dma.done.wait [#allocation3], 128  }
  0x10   :  { %629 = vsyncadd [#allocation3], 4294967168 }
  0x11   :  { %630 = dma.done.wait [#allocation6], 1920  }
  0x12   :  { %631 = vsyncadd [#allocation6], 4294965376 }
  0x13   :  { %632 = dma.done.wait [#allocation9], 128  }
  0x14   :  { %633 = vsyncadd [#allocation9], 4294967168  ;;  %v472_v0 = vld [vmem:[#allocation7 + $0x8] sm:$0xff]  ;;  %v471_v1 = vld [vmem:[#allocation7] sm:$0xff]  ;;  %vm105_vm0 = vcmask 261120   ;;  %vm160_vm1 = vcmask 523264  }
  0x15   :  { %115 = vmatpush.bf16.msra.mxu0 %v472_v0  ;;  %v470_v2 = vld [vmem:[#allocation2] sm:$0xff]  ;;  %v475_v4 = vld [vmem:[#allocation7 + $0x20] sm:$0xff]  ;;  %v474_v5 = vld [vmem:[#allocation7 + $0x18] sm:$0xff]  ;;  %s644_s2 = smov 80   ;;  %s645_s3 = smov 112   ;;  %vm303_vm2 = vcmask 130048  }
  0x16   :  { %v476_v3 = vld [vmem:[#allocation7 + $0x28] sm:$0xff]  ;;  %v473_v6 = vld [vmem:[#allocation7 + $0x10] sm:$0xff]  ;;  %v478_v15 = vld [vmem:[#allocation7 + $0x38] sm:$0xff]  ;;  %s646_s11 = smov 32   ;;  %s647_s12 = smov 96   ;;  %vm379_vm3 = vcmask 392192  }
  0x17   :  { %168 = vmatpush.bf16.msra.mxu1 %v476_v3  ;;  %v498_v8 = vld [vmem:[#allocation8] ss:$0 sm:$0xff]  ;;  %208 = vmatpush.bf16.msra.mxu2 %v478_v15  ;;  %v477_v16 = vld [vmem:[#allocation7 + $0x30] sm:$0xff]  ;;  %v499_v18 = vld [vmem:[#allocation8 + $0x1] ss:$0 sm:$0xff]  ;;  %s648_s13 = smov 48  }
  0x18   :  { %v480_v25 = vld [vmem:[#allocation7 + $0x48] sm:$0xff]  ;;  %v479_v26 = vld [vmem:[#allocation7 + $0x40] sm:$0xff]  ;;  %v260_v41 = vld [vmem:[#allocation5] sm:$0xff]  ;;  %vm382_vm4 = vcmask 654336   ;;  %s649_s14 = smov [#allocation10]   ;;  %s393_s18 = sshll.u32 %s711_s4, 4  ;;  %s394_s18 = int_to_ptr.hbm [resolvable:$true] %s393_s18 }
  0x19   :  { %116 = vmatpush.bf16.msra.mxu0 %v471_v1  ;;  %246 = vmatpush.bf16.msra.mxu3 %v480_v25  ;;  %v500_v27 = vld [vmem:[#allocation8 + $0x2] ss:$0 sm:$0xff]  ;;  %v261_v44 = vld [vmem:[#allocation5 + $0x8] sm:$0xff]  ;;  %v481_v47 = vld [vmem:[#allocation7 + $0x50] sm:$0xff]  ;;  %s391_s15 = sshll.u32 %s649_s14, 4  ;;  %s392_s15 = int_to_ptr.vmem [resolvable:$true] %s391_s15 }
  0x1a   :  { %v483_v52 = vld [vmem:[#allocation7 + $0x60] sm:$0xff]  ;;  %v501_v55 = vld [vmem:[#allocation8 + $0x3] ss:$0 sm:$0xff]  ;;  %v482_v63 = vld [vmem:[#allocation7 + $0x58] sm:$0xff] }
  0x1b   :  { %169 = vmatpush.bf16.msra.mxu1 %v475_v4  ;;  %209 = vmatpush.bf16.msra.mxu2 %v477_v16  ;;  %v502_v1 = vld [vmem:[#allocation8 + $0x4] ss:$0 sm:$0xff] }
  0x1c   :  { %420 = vmatmul.msk.bf16.vlgmr.msra.gmra.mxu0 %vm105_vm0, %v470_v2 }
  0x1d   :  { %247 = vmatpush.bf16.msra.mxu3 %v479_v26  ;;  %314 = vmatpush.bf16.msrb.mxu0 %v481_v47 }
  0x1f   :  { %170 = vmatpush.bf16.msra.mxu1 %v474_v5  ;;  %351 = vmatpush.bf16.msrb.mxu2 %v483_v52 }
  0x23   :  { %171 = vmatpush.bf16.msra.mxu1 %v473_v6  ;;  %352 = vmatpush.bf16.msrb.mxu2 %v482_v63 }
  0x99   :  { %v118_v7 = vpop.f32.mrf.mxu0 }
  0x9a   :  { %v119_v9 = vadd.f32 %v498_v8, %v118_v7 }
  0x9c   :  { %v123_v12 = vmax.f32 %v119_v9, 0.0 }
  0xa1   :  { %v120_v10 = vpop.f32.mrf.mxu0 }
  0xa2   :  { %v121_v11 = vadd.f32 %v498_v8, %v120_v10  ;;  %v503_v8 = vld [vmem:[#allocation8 + $0x5] ss:$0 sm:$0xff] }
  0xa4   :  { %v124_v13 = vmax.f32 %v121_v11, 0.0 }
  0xa6   :  { %v134_v14 = vpack.c.bf16 %v124_v13, %v123_v12 }
  0xa8   :  { %437 = vmatmul.msk.bf16.vlgmr.msra.gmra.mxu1 %vm160_vm1, %v134_v14 }
 0x125   :  { %v173_v17 = vpop.f32.mrf.mxu1 }
 0x126   :  { %v174_v19 = vadd.f32 %v499_v18, %v173_v17 }
 0x128   :  { %v178_v22 = vmax.f32 %v174_v19, 0.0 }
 0x12d   :  { %v175_v20 = vpop.f32.mrf.mxu1 }
 0x12e   :  { %v176_v21 = vadd.f32 %v499_v18, %v175_v20 }
 0x130   :  { %v179_v23 = vmax.f32 %v176_v21, 0.0 }
 0x132   :  { %v185_v24 = vpack.c.bf16 %v179_v23, %v178_v22 }
 0x134   :  { %446 = vmatmul.msk.bf16.vlgmr.msra.gmra.mxu2 %vm105_vm0, %v185_v24 }
 0x1b7   :  { %v211_v28 = vpop.f32.mrf.mxu2 }
 0x1b8   :  { %v212_v29 = vadd.f32 %v500_v27, %v211_v28 }
 0x1ba   :  { %v254_v30 = vmul.f32 0.5, %v212_v29  ;;  %v216_v35 = vmax.f32 %v212_v29, 0.0 }
 0x1bc   :  { %v256_v31 = vmul.f32 1.442695, %v254_v30 }
 0x1be   :  { %504 = vpow2.f32 %v256_v31 }
 0x1bf   :  { %v213_v32 = vpop.f32.mrf.mxu2 }
 0x1c0   :  { %v214_v33 = vadd.f32 %v500_v27, %v213_v32 }
 0x1c2   :  { %v255_v34 = vmul.f32 0.5, %v214_v33  ;;  %v217_v36 = vmax.f32 %v214_v33, 0.0 }
 0x1c4   :  { %v505_v37 = vpop.eup %504  ;;  %v258_v38 = vmul.f32 1.442695, %v255_v34  ;;  %v223_v39 = vpack.c.bf16 %v217_v36, %v216_v35 }
 0x1c5   :  { %264 = vrot.lane.b32.xlu0 %v505_v37, %s644_s2 }
 0x1c6   :  { %506 = vpow2.f32 %v258_v38  ;;  %455 = vmatmul.msk.bf16.vlgmr.msra.gmra.mxu3 %vm105_vm0, %v223_v39 }
 0x1cc   :  { %v507_v40 = vpop.eup %506 }
 0x1cd   :  { %266 = vrot.lane.b32.xlu0 %v507_v40, %s644_s2 }
 0x1d5   :  { %361 = vrot.lane.b32.xlu0 %v212_v29, %s645_s3 }
 0x237   :  { %v265_v42 = vpop.permute.xlu0 %264 }
 0x238   :  { %v270_v43 = vmul.f32 %v265_v42, %v260_v41 }
 0x23a   :  { %274 = vrot.lane.b32.xlu1 %v270_v43, %s646_s11 }
 0x23f   :  { %v267_v45 = vpop.permute.xlu0 %266 }
 0x240   :  { %v271_v46 = vmul.f32 %v267_v45, %v261_v44 }
 0x242   :  { %276 = vrot.lane.b32.xlu1 %v271_v46, %s646_s11 }
 0x247   :  { %v362_v13 = vpop.permute.xlu0 %361 }
 0x249   :  { %v249_v53 = vpop.f32.mrf.mxu3 }
 0x24a   :  { %363 = vrot.lane.b32.xlu1 %v214_v33, %s645_s3  ;;  %v250_v57 = vadd.f32 %v501_v55, %v249_v53 }
 0x24c   :  { %v375_v14 = vsel %vm303_vm2, %v250_v57, %v362_v13 }
 0x24d   :  { %v377_v15 = vsel %vm105_vm0, %v375_v14, %v362_v13 }
 0x251   :  { %v251_v56 = vpop.f32.mrf.mxu3 }
 0x252   :  { %v252_v58 = vadd.f32 %v501_v55, %v251_v56 }
 0x2ac   :  { %v275_v48 = vpop.permute.xlu1 %274 }
 0x2ad   :  { %v280_v49 = vadd.f32 %v275_v48, %v212_v29 }
 0x2af   :  { %284 = vrot.lane.b32.xlu2 %v280_v49, %s647_s12 }
 0x2b4   :  { %v277_v50 = vpop.permute.xlu1 %276 }
 0x2b5   :  { %v281_v51 = vadd.f32 %v277_v50, %v214_v33 }
 0x2b7   :  { %286 = vrot.lane.b32.xlu2 %v281_v51, %s647_s12 }
 0x2bc   :  { %v364_v19 = vpop.permute.xlu1 %363 }
 0x2bd   :  { %v376_v20 = vsel %vm303_vm2, %v252_v58, %v364_v19 }
 0x2be   :  { %v378_v21 = vsel %vm105_vm0, %v376_v20, %v364_v19 }
 0x309   :  { %v285_v54 = vpop.permute.xlu2 %284 }
 0x30a   :  { %v290_v60 = vadd.f32 %v285_v54, %v250_v57 }
 0x311   :  { %v287_v59 = vpop.permute.xlu2 %286 }
 0x312   :  { %v291_v61 = vadd.f32 %v287_v59, %v252_v58 }
 0x314   :  { %v295_v62 = vpack.c.bf16 %v291_v61, %v290_v60 }
 0x316   :  { %460 = vmatmul.msk.bf16.vlgmr.msrb.gmra.mxu0 %vm303_vm2, %v295_v62 }
 0x393   :  { %v316_v0 = vpop.f32.mrf.mxu0 }
 0x394   :  { %v317_v2 = vadd.f32 %v502_v1, %v316_v0 }
 0x396   :  { %v321_v5 = vmax.f32 %v317_v2, 0.0 }
 0x39b   :  { %v318_v3 = vpop.f32.mrf.mxu0 }
 0x39c   :  { %v319_v4 = vadd.f32 %v502_v1, %v318_v3 }
 0x39e   :  { %v322_v6 = vmax.f32 %v319_v4, 0.0 }
 0x3a0   :  { %v328_v7 = vpack.c.bf16 %v322_v6, %v321_v5 }
 0x3a2   :  { %469 = vmatmul.msk.bf16.vlgmr.msrb.gmra.mxu2 %vm105_vm0, %v328_v7 }
 0x425   :  { %v354_v9 = vpop.f32.mrf.mxu2 }
 0x426   :  { %v355_v10 = vadd.f32 %v503_v8, %v354_v9 }
 0x428   :  { %369 = vrot.lane.b32.xlu2 %v355_v10, %s648_s13 }
 0x42d   :  { %v356_v11 = vpop.f32.mrf.mxu2 }
 0x42e   :  { %v357_v12 = vadd.f32 %v503_v8, %v356_v11 }
 0x430   :  { %371 = vrot.lane.b32.xlu0 %v357_v12, %s648_s13 }
 0x482   :  { %v370_v16 = vpop.permute.xlu2 %369 }
 0x483   :  { %v380_v17 = vsel %vm379_vm3, %v377_v15, %v370_v16 }
 0x484   :  { %v383_v18 = vsel %vm382_vm4, %v380_v17, 0.0 }
 0x485   :  { %385 = vst [vmem:[#allocation10] sm:$0xff] %v383_v18 }
 0x4a2   :  { %v372_v22 = vpop.permute.xlu0 %371 }
 0x4a3   :  { %v381_v23 = vsel %vm379_vm3, %v378_v21, %v372_v22 }
 0x4a4   :  { %v384_v24 = vsel %vm382_vm4, %v381_v23, 0.0 }
 0x4a5   :  { %386 = vst [vmem:[#allocation10 + $0x8] sm:$0xff] %v384_v24 }
 0x4a6   :  { %399 = dma.vmem_to_hbm [thread:$0]  %s392_s15, 256, %s394_s18, [#allocation4], %s637_s23, %s637_s23, %s638_s24  }
 0x4a7   :  { %634 = dma.done.wait [#allocation4], 256  }
 0x4a8   :  { %635 = vsyncadd [#allocation4], 4294967040 }
 0x4a9   :  { %404 = vsyncpa [#allocation3], 1 }
 0x4aa   :  { %405 = vsyncpa [#allocation6], 1 }
 0x4ab   :  { %406 = vsyncpa [#allocation9], 1 }
 0x4ac   :  { %407 = vsyncpa [#allocation4], 1 }

</bundles_post_ra>
